<compile_context>
chip_gen: v5e
topology: v5e:2x2
jax: 0.10.0
libtpu: 0.0.40
codegen_flags: <defaults>
</compile_context>

<pallas_src>
import jax
import jax.numpy as jnp
import numpy as np
from jax import lax
from jax.experimental import pallas as pl
from jax.experimental.pallas import tpu as pltpu


def _make_kernel(K, CHUNK_IN, CHUNK_OUT, n_chunks):
    """Builds the kernel body with all tiling constants closed over (static)."""

    def kernel(x_ref, a_ref, w_ref, be_ref, o_ref, y_ref):
        # x_ref : (1, C_in, t_tile*V_pad)      f32  -- x, (t, v_pad) flattened on lanes
        # a_ref : (1, K, CHUNK_IN, CHUNK_OUT)  bf16 -- block-diag adjacency per chunk
        # w_ref : (K, c_tile, C_in)            bf16 -- 1x1-conv weight tile
        # be_ref: (1, c_tile, CHUNK_OUT)       f32  -- folded bias, tiled over t-chunk
        # o_ref : (1, c_tile, t_tile*W)        f32  -- lane-dense output block
        # y_ref : (K, c_tile, t_tile*V_pad)    bf16 -- VMEM scratch: conv result
        x_bf = x_ref[0].astype(jnp.bfloat16)          # cast once, on-chip

        # (1) Pointwise conv: one lane-dense MXU matmul per k over the whole tile.
        for k in range(K):
            y_ref[k] = jnp.dot(
                w_ref[k], x_bf,
                preferred_element_type=jnp.float32).astype(jnp.bfloat16)

        # (2) Graph contraction, one 128-deep matmul per (chunk, k), one store
        #     per chunk.  Bias is added once at the end of each chunk.
        def chunk(j):
            c0 = j * CHUNK_IN
            o0 = j * CHUNK_OUT
            if not isinstance(j, int):               # traced index -> alignment hints
                c0 = pl.multiple_of(c0, CHUNK_IN)
                o0 = pl.multiple_of(o0, CHUNK_OUT)
            acc = None
            for k in range(K):
                y_k = y_ref[k, :, pl.ds(c0, CHUNK_IN)]          # (c_tile, 128) bf16
                p = jnp.dot(y_k, a_ref[0, k],
                            preferred_element_type=jnp.float32)  # (c_tile, tc*W)
                acc = p if acc is None else acc + p
            o_ref[0, :, pl.ds(o0, CHUNK_OUT)] = (acc + be_ref[0]).astype(o_ref.dtype)

        if n_chunks <= 4:
            # Short, fixed trip count: static unroll (full LLO visibility).
            for j in range(n_chunks):
                chunk(j)
        else:
            # Long trip count (real T): tight loop keeps instruction footprint
            # and vreg live ranges bounded.
            def body(j, carry):
                chunk(j)
                return carry
            lax.fori_loop(0, n_chunks, body, 0)

    return kernel


def conv_temporal_graphical(x, A, weight, bias, kernel_size, *,
                            t_tile=None, c_tile=None):
    """x: (N, C_in, T, V), A: (N, K, V, W), weight: (K*C_out, C_in), bias: (K*C_out,).

    Returns (out, A) with out: (N, C_out, T, W), matching the PyTorch module
    (default temporal conv only)."""
    N, C_in, T, V = x.shape
    K = int(kernel_size)
    assert A.ndim == 4 and A.shape[:3] == (N, K, V), (A.shape, (N, K, V))
    W_nodes = A.shape[3]
    KC = weight.shape[0]
    assert KC % K == 0 and weight.shape[1] == C_in, (weight.shape, K, C_in)
    C_out = KC // K
    if bias is None:
        bias = jnp.zeros((KC,), jnp.float32)

    # ---- derived tiling constants ------------------------------------------
    # Pad V to a divisor of 128 so tc timesteps pack exactly into 128 lanes.
    if V <= 128:
        V_pad = 8
        while V_pad < V:
            V_pad *= 2
    else:
        V_pad = ((V + 127) // 128) * 128
    tc = max(1, 128 // V_pad)            # timesteps per 128-lane graph-matmul chunk
    CHUNK_IN = tc * V_pad                # == 128 when V_pad <= 128
    CHUNK_OUT = tc * W_nodes

    if c_tile is None:
        c_tile = C_out if C_out <= 128 else 128   # bounds vreg/scratch at real C_out
    assert C_out % c_tile == 0, (C_out, c_tile)
    assert c_tile == C_out or c_tile % 8 == 0, c_tile

    if t_tile is None:
        t_tile = T
    assert T % t_tile == 0 and t_tile % tc == 0, (T, t_tile, tc)
    assert t_tile == T or (t_tile * W_nodes) % 128 == 0, (t_tile, W_nodes)
    n_chunks = t_tile // tc

    # ---- wrapper-side layout plumbing (cheap vs. kernel work) ----------------
    # x stays f32 (cast on-chip); pad V only if needed; reshape is metadata-only
    # when no padding is required.
    x_p = x if V_pad == V else jnp.pad(x, ((0, 0), (0, 0), (0, 0), (0, V_pad - V)))
    x2d = x_p.reshape(N, C_in, T * V_pad).astype(jnp.float32)

    # Block-diagonal adjacency:  Abig[n,k, i*V_pad+v, i*W+w] = A[n,k,v,w], i < tc.
    # Raises MXU contraction depth from V (~16-25) to 128 at a small FLOP blowup
    # on the (cheap) graph phase; zero rows for padded v keep the math exact.
    A_p = jnp.pad(A.astype(jnp.float32),
                  ((0, 0), (0, 0), (0, V_pad - V), (0, 0)))
    eye = jnp.eye(tc, dtype=jnp.float32)
    a_big = (eye[None, None, :, None, :, None] *
             A_p[:, :, None, :, None, :]).reshape(N, K, CHUNK_IN, CHUNK_OUT)
    a_big = a_big.astype(jnp.bfloat16)

    w3 = weight.reshape(K, C_out, C_in).astype(jnp.bfloat16)

    # Conv bias folded through the graph contraction (constant over t, v),
    # pre-tiled over the t-chunk so the kernel adds it with one VALU add/chunk:
    bias_eff = jnp.einsum('kc,nkvw->ncw',
                          bias.reshape(K, C_out).astype(jnp.float32),
                          A.astype(jnp.float32))            # (N, C_out, W) f32
    bias_tiled = jnp.tile(bias_eff, (1, 1, tc))              # (N, C_out, tc*W)

    kernel = _make_kernel(K, CHUNK_IN, CHUNK_OUT, n_chunks)
    grid = (N, C_out // c_tile, T // t_tile)

    # Advisory cost estimate for XLA's scheduler.
    flops = (2 * N * K * C_out * C_in * T * V_pad                       # conv
             + 2 * N * K * C_out * (T // tc) * CHUNK_IN * CHUNK_OUT)    # graph
    bytes_accessed = (x2d.size * 4 + a_big.size * 2 + w3.size * 2
                      + bias_tiled.size * 4 + N * C_out * T * W_nodes * 4)

    # VMEM budgeting: double-buffered blocks + bf16 conv scratch.  Only raise
    # the scoped limit when the estimate exceeds the conservative default.
    block_bytes = (C_in * t_tile * V_pad * 4          # x block (f32)
                   + K * CHUNK_IN * CHUNK_OUT * 2     # a_big block (bf16)
                   + K * c_tile * C_in * 2            # weight block (bf16)
                   + c_tile * CHUNK_OUT * 4           # bias block (f32)
                   + c_tile * t_tile * W_nodes * 4)   # out block (f32)
    vmem_est = 2 * block_bytes + K * c_tile * t_tile * V_pad * 2
    vmem_limit = None
    if vmem_est > 12 * 1024 * 1024:
        vmem_limit = min(int(vmem_est * 2), 96 * 1024 * 1024)

    out_flat = pl.pallas_call(
        kernel,
        out_shape=jax.ShapeDtypeStruct((N, C_out, T * W_nodes), jnp.float32),
        grid_spec=pltpu.PrefetchScalarGridSpec(
            num_scalar_prefetch=0,
            grid=grid,
            in_specs=[
                pl.BlockSpec((1, C_in, t_tile * V_pad),
                             lambda n, ci, tt: (n, 0, tt)),
                pl.BlockSpec((1, K, CHUNK_IN, CHUNK_OUT),
                             lambda n, ci, tt: (n, 0, 0, 0)),
                pl.BlockSpec((K, c_tile, C_in),
                             lambda n, ci, tt: (0, ci, 0)),
                pl.BlockSpec((1, c_tile, CHUNK_OUT),
                             lambda n, ci, tt: (n, ci, 0)),
            ],
            out_specs=pl.BlockSpec((1, c_tile, t_tile * W_nodes),
                                   lambda n, ci, tt: (n, ci, tt)),
            scratch_shapes=[pltpu.VMEM((K, c_tile, t_tile * V_pad), jnp.bfloat16)],
        ),
        compiler_params=pltpu.CompilerParams(
            dimension_semantics=("parallel", "parallel", "parallel"),
            vmem_limit_bytes=vmem_limit),
        cost_estimate=pl.CostEstimate(flops=int(flops), transcendentals=0,
                                      bytes_accessed=int(bytes_accessed)),
    )(x2d, a_big, w3, bias_tiled)

    out = out_flat.reshape(N, C_out, T, W_nodes)   # free metadata reshape
    return out, A


def _reference(x, A, weight, bias, kernel_size):
    # Pure-JAX f32 reference of the PyTorch forward (t_kernel_size=1 conv).
    N, C_in, T, V = x.shape
    K = kernel_size
    C_out = weight.shape[0] // K
    y = jnp.einsum('oc,nctv->notv', weight, x) + bias[None, :, None, None]
    y = y.reshape(N, K, C_out, T, V)
    return jnp.einsum('nkctv,nkvw->nctw', y, A)


if __name__ == "__main__":
    # Small deterministic example.  T=32 with t_tile=16 exercises both the
    # T-tiled grid (2 steps) and the in-kernel chunk loop (2 chunks of tc=8).
    N, C_in, C_out, K, T, V = 2, 4, 8, 3, 32, 16

    key = jax.random.PRNGKey(0)
    kx, ka, kw, kb = jax.random.split(key, 4)
    x = jax.random.normal(kx, (N, C_in, T, V), dtype=jnp.float32)
    A = jax.random.normal(ka, (N, K, V, V), dtype=jnp.float32)
    weight = jax.random.normal(kw, (K * C_out, C_in), dtype=jnp.float32) * 0.1
    bias = jax.random.normal(kb, (K * C_out,), dtype=jnp.float32) * 0.1

    out, A_out = conv_temporal_graphical(x, A, weight, bias, K, t_tile=16)
    out = jax.block_until_ready(out)

    ref = _reference(x, A, weight, bias, K)
    assert out.shape == (N, C_out, T, V), out.shape
    # MXU inputs are bf16 (f32 accumulation) -> compare at bf16-level tolerance.
    np.testing.assert_allclose(np.asarray(out), np.asarray(ref), rtol=5e-2, atol=5e-2)

    print("KERNEL_OK")
</pallas_src>

<mosaic_0001>
module attributes {stable_mosaic.version = 11 : i64} {
  func.func @kernel(%arg0: i32, %arg1: i32, %arg2: i32, %arg3: memref<1x4x256xf32, #tpu.memory_space<vmem>>, %arg4: memref<1x3x128x128xbf16, #tpu.memory_space<vmem>>, %arg5: memref<3x8x4xbf16, #tpu.memory_space<vmem>>, %arg6: memref<1x8x128xf32, #tpu.memory_space<vmem>>, %arg7: memref<1x8x256xf32, #tpu.memory_space<vmem>>, %arg8: memref<3x8x256xbf16, #tpu.memory_space<vmem>>) attributes {dimension_semantics = [#tpu.dimension_semantics<parallel>, #tpu.dimension_semantics<parallel>, #tpu.dimension_semantics<parallel>], iteration_bounds = array<i64: 2, 1, 2>, scalar_prefetch = 0 : i64, scratch_operands = 1 : i64, tpu.core_type = #tpu.core_type<tc>, window_params = [{transform_indices = @transform_0, window_bounds = array<i64: 1, 4, 256>}, {transform_indices = @transform_1, window_bounds = array<i64: 1, 3, 128, 128>}, {transform_indices = @transform_2, window_bounds = array<i64: 3, 8, 4>}, {transform_indices = @transform_3, window_bounds = array<i64: 1, 8, 128>}, {transform_indices = @transform_4, window_bounds = array<i64: 1, 8, 256>}]} {
    %c0 = arith.constant 0 : index
    %c0_0 = arith.constant 0 : index
    %c0_1 = arith.constant 0 : index
    %0 = vector.load %arg3[%c0, %c0_0, %c0_1] : memref<1x4x256xf32, #tpu.memory_space<vmem>>, vector<1x4x256xf32>
    %1 = vector.shape_cast %0 : vector<1x4x256xf32> to vector<4x256xf32>
    %2 = arith.truncf %1 : vector<4x256xf32> to vector<4x256xbf16>
    %c0_2 = arith.constant 0 : index
    %c0_3 = arith.constant 0 : index
    %c0_4 = arith.constant 0 : index
    %3 = vector.load %arg5[%c0_2, %c0_3, %c0_4] : memref<3x8x4xbf16, #tpu.memory_space<vmem>>, vector<1x8x4xbf16>
    %4 = vector.shape_cast %3 : vector<1x8x4xbf16> to vector<8x4xbf16>
    %cst = arith.constant dense<0.000000e+00> : vector<8x256xf32>
    %5 = tpu.matmul %4, %2, %cst {dimension_numbers = #tpu.dot_dimension_numbers<[1], [0], [0], [1], [0, 0, 1, 1], [], []>} : vector<8x4xbf16>, vector<4x256xbf16>, vector<8x256xf32> -> vector<8x256xf32>
    %6 = arith.truncf %5 : vector<8x256xf32> to vector<8x256xbf16>
    %c0_5 = arith.constant 0 : index
    %c0_6 = arith.constant 0 : index
    %c0_7 = arith.constant 0 : index
    %7 = vector.load %arg8[%c0_5, %c0_6, %c0_7] : memref<3x8x256xbf16, #tpu.memory_space<vmem>>, vector<1x8x256xbf16>
    %8 = vector.shape_cast %7 : vector<1x8x256xbf16> to vector<8x256xbf16>
    %9 = vector.shape_cast %6 : vector<8x256xbf16> to vector<1x8x256xbf16>
    tpu.vector_store %arg8[%c0_5, %c0_6, %c0_7], %9 {strides = array<i32>} : memref<3x8x256xbf16, #tpu.memory_space<vmem>>, vector<1x8x256xbf16>,
    %c1 = arith.constant 1 : index
    %c0_8 = arith.constant 0 : index
    %c0_9 = arith.constant 0 : index
    %10 = vector.load %arg5[%c1, %c0_8, %c0_9] : memref<3x8x4xbf16, #tpu.memory_space<vmem>>, vector<1x8x4xbf16>
    %11 = vector.shape_cast %10 : vector<1x8x4xbf16> to vector<8x4xbf16>
    %cst_10 = arith.constant dense<0.000000e+00> : vector<8x256xf32>
    %12 = tpu.matmul %11, %2, %cst_10 {dimension_numbers = #tpu.dot_dimension_numbers<[1], [0], [0], [1], [0, 0, 1, 1], [], []>} : vector<8x4xbf16>, vector<4x256xbf16>, vector<8x256xf32> -> vector<8x256xf32>
    %13 = arith.truncf %12 : vector<8x256xf32> to vector<8x256xbf16>
    %c1_11 = arith.constant 1 : index
    %c0_12 = arith.constant 0 : index
    %c0_13 = arith.constant 0 : index
    %14 = vector.load %arg8[%c1_11, %c0_12, %c0_13] : memref<3x8x256xbf16, #tpu.memory_space<vmem>>, vector<1x8x256xbf16>
    %15 = vector.shape_cast %14 : vector<1x8x256xbf16> to vector<8x256xbf16>
    %16 = vector.shape_cast %13 : vector<8x256xbf16> to vector<1x8x256xbf16>
    tpu.vector_store %arg8[%c1_11, %c0_12, %c0_13], %16 {strides = array<i32>} : memref<3x8x256xbf16, #tpu.memory_space<vmem>>, vector<1x8x256xbf16>,
    %c2 = arith.constant 2 : index
    %c0_14 = arith.constant 0 : index
    %c0_15 = arith.constant 0 : index
    %17 = vector.load %arg5[%c2, %c0_14, %c0_15] : memref<3x8x4xbf16, #tpu.memory_space<vmem>>, vector<1x8x4xbf16>
    %18 = vector.shape_cast %17 : vector<1x8x4xbf16> to vector<8x4xbf16>
    %cst_16 = arith.constant dense<0.000000e+00> : vector<8x256xf32>
    %19 = tpu.matmul %18, %2, %cst_16 {dimension_numbers = #tpu.dot_dimension_numbers<[1], [0], [0], [1], [0, 0, 1, 1], [], []>} : vector<8x4xbf16>, vector<4x256xbf16>, vector<8x256xf32> -> vector<8x256xf32>
    %20 = arith.truncf %19 : vector<8x256xf32> to vector<8x256xbf16>
    %c2_17 = arith.constant 2 : index
    %c0_18 = arith.constant 0 : index
    %c0_19 = arith.constant 0 : index
    %21 = vector.load %arg8[%c2_17, %c0_18, %c0_19] : memref<3x8x256xbf16, #tpu.memory_space<vmem>>, vector<1x8x256xbf16>
    %22 = vector.shape_cast %21 : vector<1x8x256xbf16> to vector<8x256xbf16>
    %23 = vector.shape_cast %20 : vector<8x256xbf16> to vector<1x8x256xbf16>
    tpu.vector_store %arg8[%c2_17, %c0_18, %c0_19], %23 {strides = array<i32>} : memref<3x8x256xbf16, #tpu.memory_space<vmem>>, vector<1x8x256xbf16>,
    %c0_20 = arith.constant 0 : index
    %c0_21 = arith.constant 0 : index
    %c0_22 = arith.constant 0 : index
    %24 = vector.load %arg8[%c0_20, %c0_21, %c0_22] : memref<3x8x256xbf16, #tpu.memory_space<vmem>>, vector<1x8x128xbf16>
    %25 = vector.shape_cast %24 : vector<1x8x128xbf16> to vector<8x128xbf16>
    %c0_23 = arith.constant 0 : index
    %c0_24 = arith.constant 0 : index
    %c0_25 = arith.constant 0 : index
    %c0_26 = arith.constant 0 : index
    %26 = vector.load %arg4[%c0_23, %c0_24, %c0_25, %c0_26] : memref<1x3x128x128xbf16, #tpu.memory_space<vmem>>, vector<1x1x128x128xbf16>
    %27 = vector.shape_cast %26 : vector<1x1x128x128xbf16> to vector<128x128xbf16>
    %cst_27 = arith.constant dense<0.000000e+00> : vector<8x128xf32>
    %28 = tpu.matmul %25, %27, %cst_27 {dimension_numbers = #tpu.dot_dimension_numbers<[1], [0], [0], [1], [0, 0, 1, 1], [], []>} : vector<8x128xbf16>, vector<128x128xbf16>, vector<8x128xf32> -> vector<8x128xf32>
    %c1_28 = arith.constant 1 : index
    %c0_29 = arith.constant 0 : index
    %c0_30 = arith.constant 0 : index
    %29 = vector.load %arg8[%c1_28, %c0_29, %c0_30] : memref<3x8x256xbf16, #tpu.memory_space<vmem>>, vector<1x8x128xbf16>
    %30 = vector.shape_cast %29 : vector<1x8x128xbf16> to vector<8x128xbf16>
    %c0_31 = arith.constant 0 : index
    %c1_32 = arith.constant 1 : index
    %c0_33 = arith.constant 0 : index
    %c0_34 = arith.constant 0 : index
    %31 = vector.load %arg4[%c0_31, %c1_32, %c0_33, %c0_34] : memref<1x3x128x128xbf16, #tpu.memory_space<vmem>>, vector<1x1x128x128xbf16>
    %32 = vector.shape_cast %31 : vector<1x1x128x128xbf16> to vector<128x128xbf16>
    %cst_35 = arith.constant dense<0.000000e+00> : vector<8x128xf32>
    %33 = tpu.matmul %30, %32, %cst_35 {dimension_numbers = #tpu.dot_dimension_numbers<[1], [0], [0], [1], [0, 0, 1, 1], [], []>} : vector<8x128xbf16>, vector<128x128xbf16>, vector<8x128xf32> -> vector<8x128xf32>
    %34 = arith.addf %28, %33 : vector<8x128xf32>
    %c2_36 = arith.constant 2 : index
    %c0_37 = arith.constant 0 : index
    %c0_38 = arith.constant 0 : index
    %35 = vector.load %arg8[%c2_36, %c0_37, %c0_38] : memref<3x8x256xbf16, #tpu.memory_space<vmem>>, vector<1x8x128xbf16>
    %36 = vector.shape_cast %35 : vector<1x8x128xbf16> to vector<8x128xbf16>
    %c0_39 = arith.constant 0 : index
    %c2_40 = arith.constant 2 : index
    %c0_41 = arith.constant 0 : index
    %c0_42 = arith.constant 0 : index
    %37 = vector.load %arg4[%c0_39, %c2_40, %c0_41, %c0_42] : memref<1x3x128x128xbf16, #tpu.memory_space<vmem>>, vector<1x1x128x128xbf16>
    %38 = vector.shape_cast %37 : vector<1x1x128x128xbf16> to vector<128x128xbf16>
    %cst_43 = arith.constant dense<0.000000e+00> : vector<8x128xf32>
    %39 = tpu.matmul %36, %38, %cst_43 {dimension_numbers = #tpu.dot_dimension_numbers<[1], [0], [0], [1], [0, 0, 1, 1], [], []>} : vector<8x128xbf16>, vector<128x128xbf16>, vector<8x128xf32> -> vector<8x128xf32>
    %40 = arith.addf %34, %39 : vector<8x128xf32>
    %c0_44 = arith.constant 0 : index
    %c0_45 = arith.constant 0 : index
    %c0_46 = arith.constant 0 : index
    %41 = vector.load %arg6[%c0_44, %c0_45, %c0_46] : memref<1x8x128xf32, #tpu.memory_space<vmem>>, vector<1x8x128xf32>
    %42 = vector.shape_cast %41 : vector<1x8x128xf32> to vector<8x128xf32>
    %43 = arith.addf %40, %42 : vector<8x128xf32>
    %c0_47 = arith.constant 0 : index
    %c0_48 = arith.constant 0 : index
    %c0_49 = arith.constant 0 : index
    %44 = vector.load %arg7[%c0_47, %c0_48, %c0_49] : memref<1x8x256xf32, #tpu.memory_space<vmem>>, vector<1x8x128xf32>
    %45 = vector.shape_cast %44 : vector<1x8x128xf32> to vector<8x128xf32>
    %46 = vector.shape_cast %43 : vector<8x128xf32> to vector<1x8x128xf32>
    tpu.vector_store %arg7[%c0_47, %c0_48, %c0_49], %46 {strides = array<i32>} : memref<1x8x256xf32, #tpu.memory_space<vmem>>, vector<1x8x128xf32>,
    %c0_50 = arith.constant 0 : index
    %c0_51 = arith.constant 0 : index
    %c128 = arith.constant 128 : index
    %47 = vector.load %arg8[%c0_50, %c0_51, %c128] : memref<3x8x256xbf16, #tpu.memory_space<vmem>>, vector<1x8x128xbf16>
    %48 = vector.shape_cast %47 : vector<1x8x128xbf16> to vector<8x128xbf16>
    %c0_52 = arith.constant 0 : index
    %c0_53 = arith.constant 0 : index
    %c0_54 = arith.constant 0 : index
    %c0_55 = arith.constant 0 : index
    %49 = vector.load %arg4[%c0_52, %c0_53, %c0_54, %c0_55] : memref<1x3x128x128xbf16, #tpu.memory_space<vmem>>, vector<1x1x128x128xbf16>
    %50 = vector.shape_cast %49 : vector<1x1x128x128xbf16> to vector<128x128xbf16>
    %cst_56 = arith.constant dense<0.000000e+00> : vector<8x128xf32>
    %51 = tpu.matmul %48, %50, %cst_56 {dimension_numbers = #tpu.dot_dimension_numbers<[1], [0], [0], [1], [0, 0, 1, 1], [], []>} : vector<8x128xbf16>, vector<128x128xbf16>, vector<8x128xf32> -> vector<8x128xf32>
    %c1_57 = arith.constant 1 : index
    %c0_58 = arith.constant 0 : index
    %c128_59 = arith.constant 128 : index
    %52 = vector.load %arg8[%c1_57, %c0_58, %c128_59] : memref<3x8x256xbf16, #tpu.memory_space<vmem>>, vector<1x8x128xbf16>
    %53 = vector.shape_cast %52 : vector<1x8x128xbf16> to vector<8x128xbf16>
    %c0_60 = arith.constant 0 : index
    %c1_61 = arith.constant 1 : index
    %c0_62 = arith.constant 0 : index
    %c0_63 = arith.constant 0 : index
    %54 = vector.load %arg4[%c0_60, %c1_61, %c0_62, %c0_63] : memref<1x3x128x128xbf16, #tpu.memory_space<vmem>>, vector<1x1x128x128xbf16>
    %55 = vector.shape_cast %54 : vector<1x1x128x128xbf16> to vector<128x128xbf16>
    %cst_64 = arith.constant dense<0.000000e+00> : vector<8x128xf32>
    %56 = tpu.matmul %53, %55, %cst_64 {dimension_numbers = #tpu.dot_dimension_numbers<[1], [0], [0], [1], [0, 0, 1, 1], [], []>} : vector<8x128xbf16>, vector<128x128xbf16>, vector<8x128xf32> -> vector<8x128xf32>
    %57 = arith.addf %51, %56 : vector<8x128xf32>
    %c2_65 = arith.constant 2 : index
    %c0_66 = arith.constant 0 : index
    %c128_67 = arith.constant 128 : index
    %58 = vector.load %arg8[%c2_65, %c0_66, %c128_67] : memref<3x8x256xbf16, #tpu.memory_space<vmem>>, vector<1x8x128xbf16>
    %59 = vector.shape_cast %58 : vector<1x8x128xbf16> to vector<8x128xbf16>
    %c0_68 = arith.constant 0 : index
    %c2_69 = arith.constant 2 : index
    %c0_70 = arith.constant 0 : index
    %c0_71 = arith.constant 0 : index
    %60 = vector.load %arg4[%c0_68, %c2_69, %c0_70, %c0_71] : memref<1x3x128x128xbf16, #tpu.memory_space<vmem>>, vector<1x1x128x128xbf16>
    %61 = vector.shape_cast %60 : vector<1x1x128x128xbf16> to vector<128x128xbf16>
    %cst_72 = arith.constant dense<0.000000e+00> : vector<8x128xf32>
    %62 = tpu.matmul %59, %61, %cst_72 {dimension_numbers = #tpu.dot_dimension_numbers<[1], [0], [0], [1], [0, 0, 1, 1], [], []>} : vector<8x128xbf16>, vector<128x128xbf16>, vector<8x128xf32> -> vector<8x128xf32>
    %63 = arith.addf %57, %62 : vector<8x128xf32>
    %c0_73 = arith.constant 0 : index
    %c0_74 = arith.constant 0 : index
    %c0_75 = arith.constant 0 : index
    %64 = vector.load %arg6[%c0_73, %c0_74, %c0_75] : memref<1x8x128xf32, #tpu.memory_space<vmem>>, vector<1x8x128xf32>
    %65 = vector.shape_cast %64 : vector<1x8x128xf32> to vector<8x128xf32>
    %66 = arith.addf %63, %65 : vector<8x128xf32>
    %c0_76 = arith.constant 0 : index
    %c0_77 = arith.constant 0 : index
    %c128_78 = arith.constant 128 : index
    %67 = vector.load %arg7[%c0_76, %c0_77, %c128_78] : memref<1x8x256xf32, #tpu.memory_space<vmem>>, vector<1x8x128xf32>
    %68 = vector.shape_cast %67 : vector<1x8x128xf32> to vector<8x128xf32>
    %69 = vector.shape_cast %66 : vector<8x128xf32> to vector<1x8x128xf32>
    tpu.vector_store %arg7[%c0_76, %c0_77, %c128_78], %69 {strides = array<i32>} : memref<1x8x256xf32, #tpu.memory_space<vmem>>, vector<1x8x128xf32>,
    return
  }
  func.func @transform_0(%arg0: i32, %arg1: i32, %arg2: i32) -> (i32, i32, i32) {
    %c0_i32 = arith.constant 0 : i32
    %c0_i32_0 = arith.constant 0 : i32
    return %arg0, %c0_i32, %arg2 : i32, i32, i32
  }
  func.func @transform_1(%arg0: i32, %arg1: i32, %arg2: i32) -> (i32, i32, i32, i32) {
    %c0_i32 = arith.constant 0 : i32
    %c0_i32_0 = arith.constant 0 : i32
    %c0_i32_1 = arith.constant 0 : i32
    %c0_i32_2 = arith.constant 0 : i32
    return %arg0, %c0_i32, %c0_i32_0, %c0_i32_1 : i32, i32, i32, i32
  }
  func.func @transform_2(%arg0: i32, %arg1: i32, %arg2: i32) -> (i32, i32, i32) {
    %c0_i32 = arith.constant 0 : i32
    %c0_i32_0 = arith.constant 0 : i32
    %c0_i32_1 = arith.constant 0 : i32
    return %c0_i32, %arg1, %c0_i32_0 : i32, i32, i32
  }
  func.func @transform_3(%arg0: i32, %arg1: i32, %arg2: i32) -> (i32, i32, i32) {
    %c0_i32 = arith.constant 0 : i32
    %c0_i32_0 = arith.constant 0 : i32
    return %arg0, %arg1, %c0_i32 : i32, i32, i32
  }
  func.func @transform_4(%arg0: i32, %arg1: i32, %arg2: i32) -> (i32, i32, i32) {
    %c0_i32 = arith.constant 0 : i32
    return %arg0, %arg1, %arg2 : i32, i32, i32
  }
}

</mosaic_0001>

<bundles_post_ra>
// kernel: tpu_custom_call.1
= control target key start
LH: loop header
LB: loop body
LE: loop exit
PB: predicated region body
PF: predicated region fallthrough
CT: control target
= control target key end

     0   :  { %s2052_s0 = inlined_call_operand.hbm [shape: f32[2,4,512], index: 0, kind: input, shape index: {}]   ;;  %s2053_s1 = inlined_call_operand.hbm [shape: bf16[2,3,128,128], index: 1, kind: input, shape index: {}]   ;;  %s2054_s2 = inlined_call_operand.vmem [shape: bf16[3,8,4], index: 2, kind: input, shape index: {}]   ;;  %s2055_s3 = inlined_call_operand.vmem [shape: f32[2,8,128], index: 3, kind: input, shape index: {}]   ;;  %s2056_s4 = inlined_call_operand.hbm [shape: f32[2,8,512], index: 4, kind: output, shape index: {}]  }
   0x1   :  { %2062 = sst [smem:[#allocation19_spill]] %s2052_s0 }
   0x2   :  { %9 = vsyncpa [#allocation4], 0 }
   0x3   :  { %11 = vsyncpa [#allocation4 + $0x1], 0 }
   0x4   :  { %12 = vsyncpa [#allocation7], 0 }
   0x5   :  { %14 = vsyncpa [#allocation7 + $0x1], 0 }
   0x6   :  { %15 = vsyncpa [#allocation5], 0 }
   0x7   :  { %17 = vsyncpa [#allocation5 + $0x1], 0  ;;  %s1753_s15 = smov 0   ;;  %s1755_s16 = smov 0  }
   0x8   :  { %s1757_s17 = smov 0   ;;  %s1759_s18 = smov 0  }
   0x9   :  { %s1761_s19 = smov 0   ;;  %s1763_s20 = smov 0  }
   0xa   :  { %s1765_s21 = smov 0   ;;  %s1767_s22 = smov 0  }
   0xb   :  { %s1769_s23 = smov 0   ;;  %s1771_s24 = smov 0  }
   0xc   :  { %s1773_s25 = smov 0  }
   0xd LB: > { %2063 = sst [smem:[#allocation12_spill]] %s1704_s20  ;;  %s1094_s26 = sadd.s32 4294967295, %s1724_s25   ;;  %s1724_s25 = sphi %s1773_s25, %s23_s25   ;;  %s1720_s24 = sphi %s1771_s24, %s2093_s24   ;;  %s1716_s23 = sphi %s1769_s23, %s2084_s23   ;;  %s1712_s22 = sphi %s1767_s22, %s2092_s22   ;;  %s1708_s21 = sphi %s1765_s21, %s2083_s21   ;;  %s1704_s20 = sphi %s1763_s20, %s2091_s20   ;;  %s1700_s19 = sphi %s1761_s19, %s2090_s19   ;;  %s1696_s18 = sphi %s1759_s18, %s2089_s18   ;;  %s1692_s17 = sphi %s1757_s17, %s2088_s17   ;;  %s1688_s16 = sphi %s1755_s16, %s2087_s16   ;;  %s1684_s15 = sphi %s1753_s15, %s2086_s15  }
   0xe   : > { %2064 = sst [smem:[#allocation13_spill]] %s1716_s23  ;;  %s1095_s27 = sadd.s32 4294967294, %s1724_s25  }
   0xf   : > { %s35_s28 = sadd.s32 1, %s1716_s23  ;;  %s42_s29 = sadd.s32 1, %s1720_s24 }
  0x10   : > { %p36_p0 = scmp.ge.s32.totalorder %s35_s28, 2  ;;  %s51_s30 = sadd.s32 1, %s1704_s20 }
  0x11   : > { %p58_p1 = scmp.ne.s32.totalorder %s1704_s20, %s1700_s19  ;;  %p59_p2 = scmp.eq.s32.totalorder %s1724_s25, 0 }
  0x12   : > { %s2095_s28 = smov (%p36_p0, %s35_s28), 0  ;;  %s2097_s29 = smov (!%p36_p0, %s42_s29), %s1720_s24 }
  0x13   : > { %2065 = sst [smem:[#allocation14_spill]] %s2095_s28  ;;  %s47_s5 = ssub.s32 %s1716_s23, %s2095_s28 }
  0x14   : > { %p1826_p3 = por %p59_p2, %p58_p1  ;;  %p44_p4 = scmp.ge.s32.totalorder %s2097_s29, 2 }
  0x15   : > { %p64_p5 = scmp.ne.s32.totalorder %s1700_s19, %s1696_s18  ;;  %p1832_p6 = scmp.eq.s32.totalorder %s1094_s26, 0 }
  0x16   : > { %s77_s8 = sadd.s32 1, %s1692_s17  ;;  %s2099_s29 = smov (%p44_p4, %s2097_s29), 0 }
  0x17   : > { %2068 = sst [smem:[#allocation15_spill]] %s2099_s29  ;;  %p1844_p7 = por %p1832_p6, %p64_p5 }
  0x18   : > { %p84_p8 = scmp.ne.s32.totalorder %s1692_s17, %s1688_s16  ;;  %s46_s10 = ssub.s32 %s1720_s24, %s2099_s29 }
  0x19   : > { %p90_p9 = scmp.ne.s32.totalorder %s1688_s16, %s1684_s15  ;;  %s48_s11 = sor.u32 %s47_s5, %s46_s10 }
  0x1a   : > { %p75_p10 = scmp.eq.s32.totalorder %s46_s10, 0  ;;  %p49_p11 = scmp.eq.s32.totalorder %s48_s11, 0 }
  0x1b   : > { %p1856_p12 = por %p84_p8, %p59_p2  ;;  %p1868_p13 = por %p90_p9, %p1832_p6 }
  0x1c   : > { %s1861_s13 = scalar_select %p75_p10, %s1692_s17, %s77_s8  }
  0x1d   : > { %s1864_s14 = scalar_select %p49_p11, %s1704_s20, %s51_s30  }
  0x1e   : > { %2071 = sst [smem:[#allocation16_spill]] %s1861_s13  ;;  %p172_p0 = scmp.eq.s32.totalorder %s1094_s26, 3 }
  0x1f   : > { %2072 = sst [smem:[#allocation17_spill]] %s1864_s14  ;;  %p178_p4 = scmp.eq.s32.totalorder %s1095_s27, 3 }
  0x20   : > { %p1875_p2 = por %p172_p0, %p58_p1  ;;  %p1446_p8 = scmp.lt.s32.totalorder %s1724_s25, 4 }
  0x21   : > { %p1883_p10 = por %p178_p4, %p64_p5  ;;  %s205_s5 = sand.u32 1, %s1704_s20  }
  0x22   : > { %s1099_s7 = sshll.u32 %s205_s5, 3  ;;  %s1100_s8 = sshll.u32 %s1716_s23, 1 }
  0x23   : > { %s2075_s30 = scalar_select %p1883_p10, 1, 0 }
  0x24   : > { %s1101_s26 = sshll.u32 %s1720_s24, 2  ;;  %s209_s27 = scalar_lea.vmem [#allocation3], %s1099_s7 }
  0x25   : > { %2076 = sst [smem:[#allocation18_spill]] %s2075_s30  ;;  %s220_s10 = sshll.u32 %s209_s27, 4  ;;  %s221_s10 = int_to_ptr.vmem [resolvable:$true] %s220_s10 }
  0x26   : > { %s214_s11 = sadd.s32 %s1101_s26, %s1100_s8  ;;  %p1436_p1 = pnand %p1446_p8, %p1826_p3 }
  0x27   : > { %s1102_s28 = sshll.u32 %s214_s11, 2  ;;  %s2077_s0 = sld [smem:[#allocation19_spill]] }
  0x28   : > { %p1901_p5 = pnand %p1446_p8, %p1856_p12  ;;  %s206_s7 = scalar_lea.sflag [#allocation4], %s205_s5 }
  0x29   : > { %p1104_p6 = scmp.ge.s32.totalorder %s1724_s25, 1  ;;  %p257_p9 = scmp.lt.s32.totalorder %s1724_s25, 5 }
  0x2a   : > { %s227_s6 = sand.u32 1, %s1692_s17   ;;  %s1427_s8 = smul.u32 192, %s1720_s24 }
  0x2b   : > { %p258_p3 = pnand %p1104_p6, %p257_p9  ;;  %s1426_s26 = smul.u32 192, %s227_s6 }
  0x2c   : > { %s1727_s5 = smov 4  }
  0x2d   : > { %s216_s30 = scalar_lea.hbm %s2077_s0, %s1102_s28  ;;  %s236_s28 = scalar_lea.hbm %s2053_s1, %s1427_s8 }
  0x2e   : > { %s218_s23 = sshll.u32 %s216_s30, 4  ;;  %s237_s12 = sshll.u32 %s236_s28, 4  ;;  %s219_s23 = int_to_ptr.hbm [resolvable:$true] %s218_s23  ;;  %s238_s12 = int_to_ptr.hbm [resolvable:$true] %s237_s12 }
  0x2f   : > { %1438 = dma.hbm_to_vmem [thread:$0]  (!%p1436_p1), %s219_s23, 128, %s221_s10, %s206_s7  }
  0x30   : > { %s231_s14 = scalar_lea.vmem [#allocation6], %s1426_s26  ;;  %s228_s30 = scalar_lea.sflag [#allocation7], %s227_s6 }
  0x31   : > { %s239_s11 = sshll.u32 %s231_s14, 4  ;;  %s1726_s0 = smov 64   ;;  %s240_s11 = int_to_ptr.vmem [resolvable:$true] %s239_s11 }
  0x32   : > { %1441 = dma.hbm_to_vmem [thread:$0]  (!%p1901_p5), %s238_s12, 3072, %s240_s11, %s228_s30, %s1726_s0, %s1726_s0, %s1727_s5  }
  0x33   : > { %261 = sbr.rel (%p258_p3) target bundleno = 379 (0x17b), region = 36  ;;  %s1915_s23 = sand.u32 (!%p258_p3), 1, %s1700_s19  }
  0x34   : > { %s1105_s10 = sshll.u32 (!%p258_p3), %s1915_s23, 3  ;;  %s264_s7 = scalar_lea.sflag (!%p258_p3), [#allocation4], %s1915_s23 }
  0x35   : > { %s267_s8 = scalar_lea.vmem (!%p258_p3), [#allocation3], %s1105_s10 }
  0x38   : > { %1671 = dma.done.wait (%p1844_p7), %s264_s7, 128  }
  0x39   : > { %1673 = vsyncadd (%p1844_p7), %s264_s7, 4294967168  ;;  %s273_s6 = sand.u32 1, %s1688_s16  }
  0x3a   : > { %s1428_s20 = smul.u32 192, %s273_s6  ;;  %s274_s0 = scalar_lea.sflag [#allocation7], %s273_s6 }
  0x3c   : > { %s1924_s26 = scalar_lea.vmem [#allocation6], %s1428_s20 }
  0x3d   : > { %1675 = dma.done.wait (%p1868_p13), %s274_s0, 3072  }
  0x3e   : > { %1677 = vsyncadd (%p1868_p13), %s274_s0, 4294964224  ;;  %v333_v0 = vld [vmem:[%s267_s8] sm:$0xff]  ;;  %vm347_vm0 = vcmask 1041408   ;;  %vm343_vm1 = vcmask 31744   ;;  %v1383_v16 = vld [vmem:[%s1924_s26 + $0x28] sm:$0xff]  ;;  %p324_p7 = scmp.lt.s32.totalorder %s1712_s22, 1 }
  0x3f   : > { %335 = vst [vmem:[#allocation1] ss:$2 sm:$0xff] %v333_v0  ;;  %v342_v7 = vld [vmem:[%s2054_s2] sm:$0xf]  ;;  %v1110_v8 = vld [vmem:[%s2054_s2 + $0x4] sm:$0xf] }
  0x40   : > { %v1385_v9 = vld [vmem:[%s1924_s26 + $0x38] sm:$0xff]  ;;  %v1384_v13 = vld [vmem:[%s1924_s26 + $0x30] sm:$0xff]  ;;  %v1391_v17 = vld [vmem:[%s1924_s26 + $0x68] sm:$0xff]  ;;  %s325_s14 = scalar_select %p324_p7, %s1712_s22, 1 }
  0x41   : > { %v1393_v10 = vld [vmem:[%s1924_s26 + $0x78] sm:$0xff]  ;;  %v1392_v14 = vld [vmem:[%s1924_s26 + $0x70] sm:$0xff]  ;;  %v1415_v18 = vld [vmem:[%s1924_s26 + $0x68] sm:$0xff]  ;;  %s1106_s7 = sshll.u32 %s1915_s23, 4  ;;  %s1373_s8 = sshll.u32 %s1708_s21, 1 }
  0x42   : > { %v1417_v11 = vld [vmem:[%s1924_s26 + $0x78] sm:$0xff]  ;;  %v1416_v15 = vld [vmem:[%s1924_s26 + $0x70] sm:$0xff]  ;;  %v1382_v19 = vld [vmem:[%s1924_s26 + $0x20] sm:$0xff]  ;;  %s1107_s11 = sshll.u32 %s325_s14, 3  ;;  %s1374_s6 = sshll.u32 %s1712_s22, 2 }
  0x43   : > { %v1401_v12 = vld [vmem:[%s1924_s26 + $0xb8] sm:$0xff]  ;;  %v1390_v20 = vld [vmem:[%s1924_s26 + $0x60] sm:$0xff]  ;;  %v1380_v25 = vld [vmem:[%s1924_s26 + $0x10] sm:$0xff]  ;;  %s330_s10 = scalar_lea.vmem %s2055_s3, %s1107_s11  ;;  %s318_s20 = scalar_lea.vmem [#allocation8], %s1106_s7 }
  0x44   : > { %v1414_v21 = vld [vmem:[%s1924_s26 + $0x60] sm:$0xff]  ;;  %v1113_v22 = vld [vmem:[%s2054_s2 + $0x8] sm:$0xf]  ;;  %v1388_v26 = vld [vmem:[%s1924_s26 + $0x50] sm:$0xff]  ;;  %s942_s0 = sadd.s32 %s1374_s6, %s1373_s8  ;;  %s946_s13 = sshll.u32 %s318_s20, 4  ;;  %s947_s13 = int_to_ptr.vmem [resolvable:$true] %s946_s13 }
  0x45   : > { %v1381_v23 = vld [vmem:[%s1924_s26 + $0x18] sm:$0xff]  ;;  %v1379_v27 = vld [vmem:[%s1924_s26 + $0x8] sm:$0xff]  ;;  %v1378_v29 = vld [vmem:[%s1924_s26] sm:$0xff]  ;;  %s929_s21 = scalar_lea.sflag [#allocation5], %s1915_s23  ;;  %s1618_s30 = scalar_lea.hbm %s2056_s4, 64 }
  0x46   : > { %v336_v1 = vld.sshfl [vmem:[#allocation1] sm:$0xff pattern:$0x75316420]  ;;  %v337_v2 = vld.sshfl [vmem:[#allocation1 + $0x8] sm:$0xff pattern:$0x75316420] }
  0x47   : > { %v340_v3 = vpack.c.bf16 %v336_v1, %v336_v1  ;;  %v341_v4 = vpack.c.bf16 %v337_v2, %v337_v2  ;;  %v1389_v24 = vld [vmem:[%s1924_s26 + $0x58] sm:$0xff]  ;;  %v1387_v28 = vld [vmem:[%s1924_s26 + $0x48] sm:$0xff]  ;;  %v1400_v31 = vld [vmem:[%s1924_s26 + $0xb0] sm:$0xff] }
  0x48   : > { %v1425_v30 = vld [vmem:[%s1924_s26 + $0xb8] sm:$0xff]  ;;  %v1424_v32 = vld [vmem:[%s1924_s26 + $0xb0] sm:$0xff]  ;;  %v1386_v33 = vld [vmem:[%s1924_s26 + $0x40] sm:$0xff] }
  0x49   : > { %v349_v5 = vsel %vm347_vm0, %v340_v3, 0  ;;  %v352_v6 = vsel %vm347_vm0, %v341_v4, 0  ;;  %v1413_v34 = vld [vmem:[%s1924_s26 + $0x58] sm:$0xff]  ;;  %v1399_v36 = vld [vmem:[%s1924_s26 + $0xa8] sm:$0xff]  ;;  %v1412_v38 = vld [vmem:[%s1924_s26 + $0x50] sm:$0xff] }
  0x4a   : > { %361 = vmatpush.bf16.msra.mxu0 %v349_v5  ;;  %374 = vmatpush.bf16.msra.mxu1 %v352_v6  ;;  %v1409_v35 = vld [vmem:[%s1924_s26 + $0x38] sm:$0xff]  ;;  %v1423_v37 = vld [vmem:[%s1924_s26 + $0xa8] sm:$0xff]  ;;  %v1408_v39 = vld [vmem:[%s1924_s26 + $0x30] sm:$0xff] }
  0x4b   : > { %394 = vmatpush.bf16.msra.mxu2 %v349_v5  ;;  %407 = vmatpush.bf16.msra.mxu3 %v352_v6  ;;  %v1398_v40 = vld [vmem:[%s1924_s26 + $0xa0] sm:$0xff]  ;;  %v1411_v42 = vld [vmem:[%s1924_s26 + $0x48] sm:$0xff]  ;;  %v1397_v44 = vld [vmem:[%s1924_s26 + $0x98] sm:$0xff] }
  0x4c   : > { %v1422_v41 = vld [vmem:[%s1924_s26 + $0xa0] sm:$0xff]  ;;  %v1407_v43 = vld [vmem:[%s1924_s26 + $0x28] sm:$0xff]  ;;  %v1421_v45 = vld [vmem:[%s1924_s26 + $0x98] sm:$0xff] }
  0x4d   : > { %1108 = vmatmul.msk.bf16.vlgmr.msra.gmra.mxu0 %vm343_vm1, %v342_v7  ;;  %1109 = vmatmul.msk.bf16.vlgmr.msra.gmra.mxu1 %vm343_vm1, %v342_v7  ;;  %v1410_v46 = vld [vmem:[%s1924_s26 + $0x40] sm:$0xff]  ;;  %v1396_v48 = vld [vmem:[%s1924_s26 + $0x90] sm:$0xff]  ;;  %v1405_v50 = vld [vmem:[%s1924_s26 + $0x18] sm:$0xff] }
  0x4e   : > { %428 = vmatpush.bf16.msrb.mxu0 %v349_v5  ;;  %441 = vmatpush.bf16.msrb.mxu1 %v352_v6  ;;  %v1406_v47 = vld [vmem:[%s1924_s26 + $0x20] sm:$0xff]  ;;  %v1420_v49 = vld [vmem:[%s1924_s26 + $0x90] sm:$0xff]  ;;  %v1395_v51 = vld [vmem:[%s1924_s26 + $0x88] sm:$0xff] }
  0x4f   : > { %1111 = vmatmul.msk.bf16.vlgmr.msra.gmra.mxu2 %vm343_vm1, %v1110_v8  ;;  %1112 = vmatmul.msk.bf16.vlgmr.msra.gmra.mxu3 %vm343_vm1, %v1110_v8  ;;  %v1419_v52 = vld [vmem:[%s1924_s26 + $0x88] sm:$0xff]  ;;  %v1404_v53 = vld [vmem:[%s1924_s26 + $0x10] sm:$0xff]  ;;  %v1394_v54 = vld [vmem:[%s1924_s26 + $0x80] sm:$0xff] }
  0x50   : > { %594 = vmatpush.bf16.msrb.mxu3 %v1385_v9  ;;  %533 = vmatpush.bf16.msrb.mxu2 %v1393_v10  ;;  %v1418_v55 = vld [vmem:[%s1924_s26 + $0x80] sm:$0xff]  ;;  %v1403_v56 = vld [vmem:[%s1924_s26 + $0x8] sm:$0xff] }
  0x51   : > { %v1402_v57 = vld [vmem:[%s1924_s26] sm:$0xff]  ;;  %s1375_s26 = sshll.u32 %s942_s0, 3 }
  0x52   : > { %772 = vmatpush.bf16.msra.mxu1 %v1417_v11  ;;  %673 = vmatpush.bf16.msra.mxu0 %v1401_v12  ;;  %s944_s29 = scalar_lea.hbm %s2056_s4, %s1375_s26 }
  0x53   : > { %s948_s28 = sshll.u32 %s944_s29, 4  ;;  %s949_s28 = int_to_ptr.hbm [resolvable:$true] %s948_s28 }
  0x54   : > { %595 = vmatpush.bf16.msrb.mxu3 %v1384_v13  ;;  %534 = vmatpush.bf16.msrb.mxu2 %v1392_v14  ;;  %s1612_s22 = sshra.s32 %s949_s28, 4  ;;  %s1613_s22 = int_to_ptr.hbm [resolvable:$true] %s1612_s22 }
  0x55   : > { %s1614_s12 = scalar_lea.hbm %s1613_s22, 16  ;;  %p1619_p0 = scmp.lt.s32.totalorder %s1613_s22, %s2056_s4 }
  0x56   : > { %773 = vmatpush.bf16.msra.mxu1 %v1416_v15  ;;  %674 = vmatpush.bf16.msra.mxu0 %v1400_v31  ;;  %p1615_p11 = scmp.ne.s32.totalorder %s1613_s22, %s1614_s12  ;;  %p1620_p4 = scmp.lt.s32.totalorder %s1618_s30, %s1614_s12 }
  0x58   : > { %596 = vmatpush.bf16.msrb.mxu3 %v1383_v16  ;;  %535 = vmatpush.bf16.msrb.mxu2 %v1391_v17  ;;  %p1616_p12 = pnand %p1615_p11, %p1875_p2  ;;  %p1621_p8 = por %p1620_p4, %p1619_p0 }
  0x5a   : > { %774 = vmatpush.bf16.msra.mxu1 %v1415_v18  ;;  %675 = vmatpush.bf16.msra.mxu0 %v1399_v36  ;;  %p1617_p13 = pneg %p1616_p12 }
  0x5c   : > { %597 = vmatpush.bf16.msrb.mxu3 %v1382_v19  ;;  %536 = vmatpush.bf16.msrb.mxu2 %v1390_v20  ;;  %p1622_p1 = pnand %p1621_p8, %p1617_p13 }
  0x5d   : > { %1114 = vmatmul.msk.bf16.vlgmr.msrb.gmra.mxu0 %vm343_vm1, %v1113_v22  ;;  %1115 = vmatmul.msk.bf16.vlgmr.msrb.gmra.mxu1 %vm343_vm1, %v1113_v22  ;;  %v687_v22 = vld [vmem:[%s330_s10] sm:$0xff] }
  0x5e   : > { %775 = vmatpush.bf16.msra.mxu1 %v1414_v21  ;;  %676 = vmatpush.bf16.msra.mxu0 %v1398_v40 }
  0x60   : > { %598 = vmatpush.bf16.msrb.mxu3 %v1381_v23  ;;  %537 = vmatpush.bf16.msrb.mxu2 %v1389_v24 }
  0x62   : > { %776 = vmatpush.bf16.msra.mxu1 %v1413_v34  ;;  %677 = vmatpush.bf16.msra.mxu0 %v1397_v44 }
  0x64   : > { %599 = vmatpush.bf16.msrb.mxu3 %v1380_v25  ;;  %538 = vmatpush.bf16.msrb.mxu2 %v1388_v26 }
  0x66   : > { %777 = vmatpush.bf16.msra.mxu1 %v1412_v38  ;;  %678 = vmatpush.bf16.msra.mxu0 %v1396_v48 }
  0x68   : > { %600 = vmatpush.bf16.msrb.mxu3 %v1379_v27  ;;  %539 = vmatpush.bf16.msrb.mxu2 %v1387_v28 }
  0x6a   : > { %778 = vmatpush.bf16.msra.mxu1 %v1411_v42  ;;  %679 = vmatpush.bf16.msra.mxu0 %v1395_v51 }
  0x6c   : > { %601 = vmatpush.bf16.msrb.mxu3 %v1378_v29  ;;  %540 = vmatpush.bf16.msrb.mxu2 %v1386_v33 }
  0x6e   : > { %779 = vmatpush.bf16.msra.mxu1 %v1410_v46  ;;  %680 = vmatpush.bf16.msra.mxu0 %v1394_v54 }
  0x70   : > { %911 = vmatpush.bf16.msra.mxu3 %v1425_v30  ;;  %833 = vmatpush.bf16.msra.mxu2 %v1409_v35 }
  0x74   : > { %912 = vmatpush.bf16.msra.mxu3 %v1424_v32  ;;  %834 = vmatpush.bf16.msra.mxu2 %v1408_v39 }
  0x78   : > { %913 = vmatpush.bf16.msra.mxu3 %v1423_v37  ;;  %835 = vmatpush.bf16.msra.mxu2 %v1407_v43 }
  0x7c   : > { %914 = vmatpush.bf16.msra.mxu3 %v1422_v41  ;;  %836 = vmatpush.bf16.msra.mxu2 %v1406_v47 }
  0x80   : > { %915 = vmatpush.bf16.msra.mxu3 %v1421_v45  ;;  %837 = vmatpush.bf16.msra.mxu2 %v1405_v50 }
  0x84   : > { %916 = vmatpush.bf16.msra.mxu3 %v1420_v49  ;;  %838 = vmatpush.bf16.msra.mxu2 %v1404_v53 }
  0x88   : > { %917 = vmatpush.bf16.msra.mxu3 %v1419_v52  ;;  %839 = vmatpush.bf16.msra.mxu2 %v1403_v56 }
  0x8c   : > { %918 = vmatpush.bf16.msra.mxu3 %v1418_v55  ;;  %840 = vmatpush.bf16.msra.mxu2 %v1402_v57 }
  0xca   : > { %v363_v58 = vpop.f32.mrf.mxu0  ;;  %v376_v59 = vpop.f32.mrf.mxu1 }
  0xcb   : > { %v380_v60 = vpack.c.bf16 %v376_v59, %v363_v58 }
  0xcd   : > { %381 = vst [vmem:[#allocation2] sm:$0xff] %v380_v60 }
  0xd2   : > { %v396_v61 = vpop.f32.mrf.mxu2  ;;  %v409_v62 = vpop.f32.mrf.mxu3 }
  0xd3   : > { %v413_v63 = vpack.c.bf16 %v409_v62, %v396_v61  ;;  %v365_v0 = vpop.f32.mrf.mxu0  ;;  %v378_v1 = vpop.f32.mrf.mxu1 }
  0xd4   : > { %v450_v2 = vld [vmem:[#allocation2] sm:$0xf]  ;;  %v690_v14 = vld [vmem:[#allocation2 + $0x4] sm:$0xf] }
  0xd5   : > { %415 = vst [vmem:[#allocation2 + $0x8] sm:$0xff] %v413_v63  ;;  %602 = vmatmul.bf16.vlgmr.msrb.gmra.mxu3 %v450_v2 }
  0xda   : > { %v398_v3 = vpop.f32.mrf.mxu2  ;;  %v411_v4 = vpop.f32.mrf.mxu3 }
  0xdb   : > { %v430_v5 = vpop.f32.mrf.mxu0  ;;  %v443_v6 = vpop.f32.mrf.mxu1 }
  0xdc   : > { %v447_v7 = vpack.c.bf16 %v443_v6, %v430_v5  ;;  %v467_v8 = vld [vmem:[#allocation2 + $0x8] sm:$0xf]  ;;  %v707_v9 = vld [vmem:[#allocation2 + $0xc] sm:$0xf] }
  0xdd   : > { %541 = vmatmul.bf16.vlgmr.msrb.gmra.mxu2 %v467_v8  ;;  %780 = vmatmul.bf16.vlgmr.msra.gmra.mxu1 %v707_v9 }
  0xde   : > { %449 = vst [vmem:[#allocation2 + $0x10] sm:$0xff] %v447_v7 }
  0xe3   : > { %v432_v10 = vpop.f32.mrf.mxu0  ;;  %v445_v11 = vpop.f32.mrf.mxu1 }
  0xe5   : > { %v607_v12 = vld [vmem:[#allocation2 + $0x10] sm:$0xf]  ;;  %v846_v13 = vld [vmem:[#allocation2 + $0x14] sm:$0xf] }
  0xe6   : > { %681 = vmatmul.bf16.vlgmr.msra.gmra.mxu0 %v607_v12  ;;  %919 = vmatmul.bf16.vlgmr.msra.gmra.mxu3 %v846_v13 }
  0xed   : > { %841 = vmatmul.bf16.vlgmr.msra.gmra.mxu2 %v690_v14 }
 0x158   : > { %v603_v15 = vpop.f32.mrf.mxu3 }
 0x15a   : > { %v781_v16 = vpop.f32.mrf.mxu1 }
 0x160   : > { %v542_v17 = vpop.f32.mrf.mxu2  ;;  %v605_v18 = vpop.f32.mrf.mxu3 }
 0x161   : > { %v604_v19 = vadd.f32 %v603_v15, %v542_v17 }
 0x162   : > { %v783_v20 = vpop.f32.mrf.mxu1 }
 0x163   : > { %v682_v21 = vpop.f32.mrf.mxu0 }
 0x164   : > { %v686_v23 = vadd.f32 %v682_v21, %v604_v19 }
 0x166   : > { %v688_v24 = vadd.f32 %v687_v22, %v686_v23 }
 0x168   : > { %689 = vst [vmem:[%s318_s20] sm:$0xff] %v688_v24  ;;  %v544_v25 = vpop.f32.mrf.mxu2 }
 0x169   : > { %v920_v26 = vpop.f32.mrf.mxu3 }
 0x16b   : > { %v684_v27 = vpop.f32.mrf.mxu0 }
 0x170   : > { %v842_v28 = vpop.f32.mrf.mxu2 }
 0x171   : > { %v843_v29 = vadd.f32 %v842_v28, %v781_v16  ;;  %v922_v30 = vpop.f32.mrf.mxu3 }
 0x173   : > { %v924_v31 = vadd.f32 %v920_v26, %v843_v29 }
 0x175   : > { %v926_v32 = vadd.f32 %v924_v31, %v687_v22 }
 0x177   : > { %927 = vst [vmem:[%s318_s20 + $0x8] sm:$0xff] %v926_v32 }
 0x178   : > { %v844_v33 = vpop.f32.mrf.mxu2 }
 0x179   : > { %1625 = shalt.err (!%p1622_p1)
}
 0x17a   : > { %1433 = dma.vmem_to_hbm [thread:$0]  (%p1875_p2), %s947_s13, 256, %s949_s28, %s929_s21  }
 0x17b PF: > { %p1447_p5 = scmp.ge.s32.totalorder %s1724_s25, 2  ;;  %s960_s7 = sand.u32 1, %s1696_s18  }
 0x17c   : > { %s961_s8 = scalar_lea.sflag [#allocation5], %s960_s7 }
 0x17d   : > { %p1443_p6 = pnand %p1447_p5, %p1883_p10 }
 0x17f   : > { %p1444_p9 = pneg %p1443_p6 }
 0x181   : > { %1679 = dma.done.wait (%p1444_p9), %s961_s8, 256  }
 0x182   : > { %1681 = vsyncadd (%p1444_p9), %s961_s8, 4294967040  ;;  %s23_s25 = sadd.s32 1, %s1724_s25   ;;  %s2080_s6 = sld [smem:[#allocation16_spill]] }
 0x183   : > { %p20_p3 = scmp.ge.s32.totalorder %s23_s25, 6   ;;  %s2081_s20 = sld [smem:[#allocation12_spill]] }
 0x184   : > { %s2082_s0 = sld [smem:[#allocation17_spill]]  ;;  %s2086_s15 = smov %s1688_s16 }
 0x185   : > { %s2083_s21 = sld [smem:[#allocation13_spill]]  ;;  %s2087_s16 = smov %s1692_s17 }
 0x186   : > { %s2084_s23 = sld [smem:[#allocation14_spill]]  ;;  %s2089_s18 = smov %s1700_s19 }
 0x187   : > { %s2085_s26 = sld [smem:[#allocation15_spill]]  ;;  %s2092_s22 = smov %s1720_s24 }
 0x188   : > { %s2088_s17 = smov %s2080_s6 }
 0x189   : > { %s2090_s19 = smov %s2081_s20  ;;  %22 = sbr.rel (!%p20_p3) target bundleno = 13 (0xd), region = 106 }
 0x18a   : > { %s2091_s20 = smov %s2082_s0 }
 0x18d   : > { %s2093_s24 = smov %s2085_s26 }
 0x18e   :  { %967 = vsyncpa [#allocation4], 1 }
 0x18f   :  { %969 = vsyncpa [#allocation4 + $0x1], 1 }
 0x190   :  { %970 = vsyncpa [#allocation7], 1 }
 0x191   :  { %972 = vsyncpa [#allocation7 + $0x1], 1 }
 0x192   :  { %973 = vsyncpa [#allocation5], 1 }
 0x193   :  { %975 = vsyncpa [#allocation5 + $0x1], 1 }

</bundles_post_ra>
